<compile_context>
chip_gen: v7x
topology: tpu7x:2x2x1
jax: 0.10.0
libtpu: 0.0.40
codegen_flags: <defaults>
</compile_context>

<pallas_src>
import functools

import jax
import jax.numpy as jnp
from jax.experimental import pallas as pl
from jax.experimental.pallas import tpu as pltpu


_CHUNK = 2048  # lanes per inner compute sub-chunk (keeps h1/h2 VMEM small)


def _round_up(n, m):
    return ((n + m - 1) // m) * m


def _make_mlp_kernel(chunk, n_chunks):
    """Build the fused-MLP kernel for a given (static) inner-chunking config."""

    def kernel(x_ref, w1_ref, b1_ref, w2_ref, b2_ref, w3_ref, b3_ref, o_ref):
        # x:  (1,  bb)   f32
        # w1: (64, 1)    f32   b1: (64, 1) f32
        # w2: (32, 64)   bf16  b2: (32, 1) f32
        # w3: (2,  32)   bf16  b3: (2,  1) f32
        # o:  (2,  bb)   f32
        # Weights/biases are tiny and VMEM-resident; load once, hoisted out of loop.
        w1 = w1_ref[...]
        b1 = b1_ref[...]
        w2 = w2_ref[...]
        b2 = b2_ref[...]
        w3 = w3_ref[...]
        b3 = b3_ref[...]

        def body(c, carry):
            off = pl.multiple_of(c * chunk, chunk)
            x = x_ref[:, pl.ds(off, chunk)]                           # (1, chunk)

            # Layer 1 (K=1): VPU broadcast outer product — no MXU pass.
            h1 = jnp.maximum(w1 * x + b1, 0.0)                        # (64, chunk) f32

            # Layer 2: bf16 operands on the MXU, f32 accumulation.
            h2 = jnp.dot(w2, h1.astype(jnp.bfloat16),
                         preferred_element_type=jnp.float32) + b2
            h2 = jnp.maximum(h2, 0.0)                                 # (32, chunk) f32

            # Layer 3: bf16 operands on the MXU, f32 accumulation.
            out = jnp.dot(w3, h2.astype(jnp.bfloat16),
                          preferred_element_type=jnp.float32) + b3    # (2, chunk) f32

            o_ref[:, pl.ds(off, chunk)] = out.astype(o_ref.dtype)
            return carry

        if n_chunks == 1:
            body(0, 0)
        else:
            jax.lax.fori_loop(0, n_chunks, body, 0)

    return kernel


@functools.partial(jax.jit, static_argnames=("block_b", "batch_major"))
def policy_net_forward(x, params, *, block_b=32768, batch_major=True):
    """x: (B, 1) float32 -> logits, same math as PolicyNet.forward.

    Returns (B, 2) by default (PyTorch contract).  batch_major=False returns the
    lane-dense (2, B) layout and skips the final transpose pass.
    """
    w1, b1, w2, b2, w3, b3 = params
    B = x.shape[0]

    # ---- tile selection (all static) -------------------------------------------
    b128 = _round_up(B, 128)
    bb = min(_round_up(block_b, 128), b128)
    # If a large batch would fit a single tile, split it in two so the "parallel"
    # grid axis can shard across the 2 TensorCores on v7x.
    if bb == b128 and b128 >= 4 * _CHUNK:
        bb = _round_up(b128 // 2, 128)
    # Inner sub-chunk must evenly divide the block.
    if bb > _CHUNK:
        bb = _round_up(bb, _CHUNK)
        chunk = _CHUNK
    else:
        chunk = bb
    n_chunks = bb // chunk
    grid = (pl.cdiv(B, bb),)  # no jnp.pad: ragged tail handled as a partial block

    # ---- operand prep (cheap, layout-trivial) -----------------------------------
    # Feature dim is 1, so (B, 1) -> (1, B) is a free reshape (batch lands on lanes).
    x_t = x.reshape(1, B)
    # Column biases broadcast over the lane (batch) axis; MXU operands in bf16.
    w1c = w1.astype(jnp.float32)
    b1c = b1.reshape(-1, 1).astype(jnp.float32)
    w2h = w2.astype(jnp.bfloat16)
    b2c = b2.reshape(-1, 1).astype(jnp.float32)
    w3h = w3.astype(jnp.bfloat16)
    b3c = b3.reshape(-1, 1).astype(jnp.float32)

    const = lambda arr: pl.BlockSpec(arr.shape, lambda i: (0, 0))

    n_param_bytes = sum(int(a.size) * a.dtype.itemsize
                        for a in (w1c, b1c, w2h, b2c, w3h, b3c))
    cost = pl.CostEstimate(
        flops=2 * B * (1 * 64 + 64 * 32 + 32 * 2),
        transcendentals=0,
        bytes_accessed=B * 4 + 2 * B * 4 + n_param_bytes,  # ~12 B/sample + params
    )

    out_t = pl.pallas_call(
        _make_mlp_kernel(chunk, n_chunks),
        out_shape=jax.ShapeDtypeStruct((2, B), jnp.float32),
        grid_spec=pltpu.PrefetchScalarGridSpec(
            num_scalar_prefetch=0,
            grid=grid,
            in_specs=[
                pl.BlockSpec((1, bb), lambda i: (0, i)),      # x tile (lane-dense)
                const(w1c), const(b1c),
                const(w2h), const(b2c),
                const(w3h), const(b3c),
            ],
            out_specs=pl.BlockSpec((2, bb), lambda i: (0, i)),  # lane-dense output
        ),
        compiler_params=pltpu.CompilerParams(
            dimension_semantics=("parallel",),
            vmem_limit_bytes=32 * 1024 * 1024,   # explicit budget; safe on v5e/v6e/v7x
        ),
        cost_estimate=cost,
    )(x_t, w1c, b1c, w2h, b2c, w3h, b3c)

    if batch_major:
        # PyTorch contract (B, 2).  This is an extra HBM pass for a 2-wide result;
        # use batch_major=False when the consumer can take (2, B) directly.
        return jnp.transpose(out_t)
    return out_t


def init_params(key):
    """PyTorch nn.Linear-style init; weights in torch (out_features, in_features) layout."""
    def linear(key, fan_in, fan_out):
        kw, kb = jax.random.split(key)
        bound = 1.0 / jnp.sqrt(fan_in)
        w = jax.random.uniform(kw, (fan_out, fan_in), jnp.float32, -bound, bound)
        b = jax.random.uniform(kb, (fan_out,), jnp.float32, -bound, bound)
        return w, b

    k1, k2, k3 = jax.random.split(key, 3)
    w1, b1 = linear(k1, 1, 64)
    w2, b2 = linear(k2, 64, 32)
    w3, b3 = linear(k3, 32, 2)
    return (w1, b1, w2, b2, w3, b3)


def _reference(x, params):
    w1, b1, w2, b2, w3, b3 = params
    h1 = jnp.maximum(x @ w1.T + b1, 0.0)
    h2 = jnp.maximum(h1 @ w2.T + b2, 0.0)
    return h2 @ w3.T + b3


if __name__ == "__main__":
    key = jax.random.PRNGKey(0)
    k_params, k_x = jax.random.split(key)

    params = init_params(k_params)

    # PolicyNet operates on scalar states: x has shape (batch, 1).
    B = 8
    x = jax.random.normal(k_x, (B, 1), jnp.float32)

    out = jax.block_until_ready(policy_net_forward(x, params))
    ref = _reference(x, params)
    assert out.shape == (B, 2)
    # bf16 MXU operands (f32 accumulation) -> tolerance vs the f32 reference is ~1e-2.
    assert jnp.allclose(out, ref, atol=2e-2, rtol=2e-2), "mismatch vs pure-JAX reference"

    # Ragged batch (not a multiple of 128): exercises the partial last block (no pad).
    x2 = jax.random.normal(jax.random.PRNGKey(7), (200, 1), jnp.float32)
    out2 = jax.block_until_ready(policy_net_forward(x2, params))
    assert jnp.allclose(out2, _reference(x2, params), atol=2e-2, rtol=2e-2)

    # Larger batch: exercises the inner sub-chunk loop plus a partial tail block.
    x3 = jax.random.normal(jax.random.PRNGKey(11), (4500, 1), jnp.float32)
    out3 = jax.block_until_ready(policy_net_forward(x3, params))
    assert jnp.allclose(out3, _reference(x3, params), atol=2e-2, rtol=2e-2)

    # Lane-dense (2, B) output path (skips the (B, 2) transpose pass).
    out4 = jax.block_until_ready(policy_net_forward(x2, params, batch_major=False))
    assert out4.shape == (2, 200)
    assert jnp.allclose(out4.T, _reference(x2, params), atol=2e-2, rtol=2e-2)

    print("KERNEL_OK")
</pallas_src>

<mosaic_0001>
module attributes {stable_mosaic.version = 11 : i64} {
  func.func @kernel(%arg0: i32, %arg1: memref<1x128xf32, #tpu.memory_space<vmem>>, %arg2: memref<64x1xf32, #tpu.memory_space<vmem>>, %arg3: memref<64x1xf32, #tpu.memory_space<vmem>>, %arg4: memref<32x64xbf16, #tpu.memory_space<vmem>>, %arg5: memref<32x1xf32, #tpu.memory_space<vmem>>, %arg6: memref<2x32xbf16, #tpu.memory_space<vmem>>, %arg7: memref<2x1xf32, #tpu.memory_space<vmem>>, %arg8: memref<2x128xf32, #tpu.memory_space<vmem>>) attributes {dimension_semantics = [#tpu.dimension_semantics<parallel>], iteration_bounds = array<i64: 1>, scalar_prefetch = 0 : i64, scratch_operands = 0 : i64, tpu.core_type = #tpu.core_type<tc>, window_params = [{transform_indices = @transform_0, window_bounds = array<i64: 1, 128>}, {pipeline_mode = #tpu.pipeline_mode<synchronous>, transform_indices = @transform_1, window_bounds = array<i64: 64, 1>}, {pipeline_mode = #tpu.pipeline_mode<synchronous>, transform_indices = @transform_2, window_bounds = array<i64: 64, 1>}, {pipeline_mode = #tpu.pipeline_mode<synchronous>, transform_indices = @transform_3, window_bounds = array<i64: 32, 64>}, {pipeline_mode = #tpu.pipeline_mode<synchronous>, transform_indices = @transform_4, window_bounds = array<i64: 32, 1>}, {pipeline_mode = #tpu.pipeline_mode<synchronous>, transform_indices = @transform_5, window_bounds = array<i64: 2, 32>}, {pipeline_mode = #tpu.pipeline_mode<synchronous>, transform_indices = @transform_6, window_bounds = array<i64: 2, 1>}, {transform_indices = @transform_7, window_bounds = array<i64: 2, 128>}]} {
    %c0 = arith.constant 0 : index
    %c0_0 = arith.constant 0 : index
    %0 = vector.load %arg2[%c0, %c0_0] : memref<64x1xf32, #tpu.memory_space<vmem>>, vector<64x1xf32>
    %c0_1 = arith.constant 0 : index
    %c0_2 = arith.constant 0 : index
    %1 = vector.load %arg3[%c0_1, %c0_2] : memref<64x1xf32, #tpu.memory_space<vmem>>, vector<64x1xf32>
    %c0_3 = arith.constant 0 : index
    %c0_4 = arith.constant 0 : index
    %2 = vector.load %arg4[%c0_3, %c0_4] : memref<32x64xbf16, #tpu.memory_space<vmem>>, vector<32x64xbf16>
    %c0_5 = arith.constant 0 : index
    %c0_6 = arith.constant 0 : index
    %3 = vector.load %arg5[%c0_5, %c0_6] : memref<32x1xf32, #tpu.memory_space<vmem>>, vector<32x1xf32>
    %c0_7 = arith.constant 0 : index
    %c0_8 = arith.constant 0 : index
    %4 = vector.load %arg6[%c0_7, %c0_8] : memref<2x32xbf16, #tpu.memory_space<vmem>>, vector<2x32xbf16>
    %c0_9 = arith.constant 0 : index
    %c0_10 = arith.constant 0 : index
    %5 = vector.load %arg7[%c0_9, %c0_10] : memref<2x1xf32, #tpu.memory_space<vmem>>, vector<2x1xf32>
    %c0_i32 = arith.constant 0 : i32
    %6 = tpu.assume_multiple %c0_i32, 128 : i32
    %c0_11 = arith.constant 0 : index
    %7 = arith.index_cast %6 : i32 to index
    %8 = vector.load %arg1[%c0_11, %7] : memref<1x128xf32, #tpu.memory_space<vmem>>, vector<1x128xf32>
    %9 = vector.broadcast %0 : vector<64x1xf32> to vector<64x128xf32>
    %10 = vector.broadcast %8 : vector<1x128xf32> to vector<64x128xf32>
    %11 = arith.mulf %9, %10 : vector<64x128xf32>
    %12 = vector.broadcast %1 : vector<64x1xf32> to vector<64x128xf32>
    %13 = arith.addf %11, %12 : vector<64x128xf32>
    %cst = arith.constant 0.000000e+00 : f32
    %14 = vector.broadcast %cst : f32 to vector<64x128xf32>
    %15 = arith.maximumf %13, %14 : vector<64x128xf32>
    %16 = arith.truncf %15 : vector<64x128xf32> to vector<64x128xbf16>
    %cst_12 = arith.constant dense<0.000000e+00> : vector<32x128xf32>
    %17 = tpu.matmul %2, %16, %cst_12 {dimension_numbers = #tpu.dot_dimension_numbers<[1], [0], [0], [1], [0, 0, 1, 1], [], []>} : vector<32x64xbf16>, vector<64x128xbf16>, vector<32x128xf32> -> vector<32x128xf32>
    %18 = vector.broadcast %3 : vector<32x1xf32> to vector<32x128xf32>
    %19 = arith.addf %17, %18 : vector<32x128xf32>
    %cst_13 = arith.constant 0.000000e+00 : f32
    %20 = vector.broadcast %cst_13 : f32 to vector<32x128xf32>
    %21 = arith.maximumf %19, %20 : vector<32x128xf32>
    %22 = arith.truncf %21 : vector<32x128xf32> to vector<32x128xbf16>
    %cst_14 = arith.constant dense<0.000000e+00> : vector<2x128xf32>
    %23 = tpu.matmul %4, %22, %cst_14 {dimension_numbers = #tpu.dot_dimension_numbers<[1], [0], [0], [1], [0, 0, 1, 1], [], []>} : vector<2x32xbf16>, vector<32x128xbf16>, vector<2x128xf32> -> vector<2x128xf32>
    %24 = vector.broadcast %5 : vector<2x1xf32> to vector<2x128xf32>
    %25 = arith.addf %23, %24 : vector<2x128xf32>
    %c0_15 = arith.constant 0 : index
    %26 = arith.index_cast %6 : i32 to index
    %27 = vector.load %arg8[%c0_15, %26] : memref<2x128xf32, #tpu.memory_space<vmem>>, vector<2x128xf32>
    tpu.vector_store %arg8[%c0_15, %26], %25 {strides = array<i32>} : memref<2x128xf32, #tpu.memory_space<vmem>>, vector<2x128xf32>,
    return
  }
  func.func @transform_0(%arg0: i32) -> (i32, i32) {
    %c0_i32 = arith.constant 0 : i32
    %c0_i32_0 = arith.constant 0 : i32
    return %c0_i32, %arg0 : i32, i32
  }
  func.func @transform_1(%arg0: i32) -> (i32, i32) {
    %c0_i32 = arith.constant 0 : i32
    %c0_i32_0 = arith.constant 0 : i32
    %c0_i32_1 = arith.constant 0 : i32
    return %c0_i32, %c0_i32_0 : i32, i32
  }
  func.func @transform_2(%arg0: i32) -> (i32, i32) {
    %c0_i32 = arith.constant 0 : i32
    %c0_i32_0 = arith.constant 0 : i32
    %c0_i32_1 = arith.constant 0 : i32
    return %c0_i32, %c0_i32_0 : i32, i32
  }
  func.func @transform_3(%arg0: i32) -> (i32, i32) {
    %c0_i32 = arith.constant 0 : i32
    %c0_i32_0 = arith.constant 0 : i32
    %c0_i32_1 = arith.constant 0 : i32
    return %c0_i32, %c0_i32_0 : i32, i32
  }
  func.func @transform_4(%arg0: i32) -> (i32, i32) {
    %c0_i32 = arith.constant 0 : i32
    %c0_i32_0 = arith.constant 0 : i32
    %c0_i32_1 = arith.constant 0 : i32
    return %c0_i32, %c0_i32_0 : i32, i32
  }
  func.func @transform_5(%arg0: i32) -> (i32, i32) {
    %c0_i32 = arith.constant 0 : i32
    %c0_i32_0 = arith.constant 0 : i32
    %c0_i32_1 = arith.constant 0 : i32
    return %c0_i32, %c0_i32_0 : i32, i32
  }
  func.func @transform_6(%arg0: i32) -> (i32, i32) {
    %c0_i32 = arith.constant 0 : i32
    %c0_i32_0 = arith.constant 0 : i32
    %c0_i32_1 = arith.constant 0 : i32
    return %c0_i32, %c0_i32_0 : i32, i32
  }
  func.func @transform_7(%arg0: i32) -> (i32, i32) {
    %c0_i32 = arith.constant 0 : i32
    %c0_i32_0 = arith.constant 0 : i32
    return %c0_i32, %arg0 : i32, i32
  }
}

</mosaic_0001>

<bundles_post_ra>
// kernel: policy_net_forward.1
= control target key start
LH: loop header
LB: loop body
LE: loop exit
PB: predicated region body
PF: predicated region fallthrough
CT: control target
= control target key end

     0   :  { %v392_v2 = vmov 0   ;;  %s525_s0 = inlined_call_operand.vmem [shape: f32[1,8], index: 0, kind: input, shape index: {}]   ;;  %s526_s1 = inlined_call_operand.vmem [shape: f32[64,1], index: 1, kind: input, shape index: {}]   ;;  %s527_s2 = inlined_call_operand.vmem [shape: f32[64,1], index: 2, kind: input, shape index: {}]   ;;  %s528_s3 = inlined_call_operand.vmem [shape: bf16[32,64], index: 3, kind: input, shape index: {}]   ;;  %s529_s4 = inlined_call_operand.vmem [shape: f32[32,1], index: 4, kind: input, shape index: {}]   ;;  %s530_s5 = inlined_call_operand.vmem [shape: bf16[2,32], index: 5, kind: input, shape index: {}]   ;;  %s531_s6 = inlined_call_operand.vmem [shape: f32[2,1], index: 6, kind: input, shape index: {}]   ;;  %s532_s7 = inlined_call_operand.hbm [shape: f32[2,8], index: 7, kind: output, shape index: {}]  }
   0x1   :  { %v36_v0 = vld [vmem:[%s527_s2] sm:$0xff]  ;;  %365 = vset.pattern.permute.xlu1 %v392_v2  ;;  %364 = vset.pattern.permute.xlu0 %v392_v2  ;;  %v37_v3 = vld [vmem:[%s527_s2 + $0x8] sm:$0xff]  ;;  %v31_v5 = vld [vmem:[%s526_s1 + $0x18] sm:$0xff] }
   0x2   :  { %v28_v1 = vld [vmem:[%s526_s1] sm:$0xff]  ;;  %111 = vperm.xlu1 %365, %v36_v0   ;;  %v29_v4 = vld [vmem:[%s526_s1 + $0x8] sm:$0xff]  ;;  %v30_v6 = vld [vmem:[%s526_s1 + $0x10] sm:$0xff] }
   0x3   :  { %57 = vperm.xlu0 %364, %v28_v1  }
   0x6   :  { %116 = vperm.xlu1 %365, %v37_v3  }
   0x7   :  { %62 = vperm.xlu0 %364, %v29_v4  }
   0x8   :  { %12 = vsyncpa [#allocation3], 0  ;;  %v39_v7 = vld [vmem:[%s527_s2 + $0x18] sm:$0xff]  ;;  %v38_v8 = vld [vmem:[%s527_s2 + $0x10] sm:$0xff]  ;;  %vm199_vm0 = vcmask 523264   ;;  %vm394_vm1 = vmmov 0  }
   0x9   :  { %v33_v9 = vld [vmem:[%s526_s1 + $0x28] sm:$0xff]  ;;  %v32_v10 = vld [vmem:[%s526_s1 + $0x20] sm:$0xff]  ;;  %v35_v13 = vld [vmem:[%s526_s1 + $0x38] sm:$0xff]  ;;  %vm266_vm2 = vcmask 261120   ;;  %s395_s22 = smov [#allocation2]  }
   0xa   :  { %72 = vperm.xlu1 %365, %v31_v5   ;;  %v41_v11 = vld [vmem:[%s527_s2 + $0x28] sm:$0xff]  ;;  %v40_v12 = vld [vmem:[%s527_s2 + $0x20] sm:$0xff]  ;;  %v34_v14 = vld [vmem:[%s526_s1 + $0x30] sm:$0xff]  ;;  %v393_v5 = vmov 0.0   ;;  %s317_s23 = sshll.u32 %s395_s22, 4  ;;  %s318_s23 = int_to_ptr.vmem [resolvable:$true] %s317_s23 }
   0xb   :  { %67 = vperm.xlu0 %364, %v30_v6   ;;  %v43_v15 = vld [vmem:[%s527_s2 + $0x38] sm:$0xff]  ;;  %v42_v16 = vld [vmem:[%s527_s2 + $0x30] sm:$0xff]  ;;  %v49_v17 = vld [vmem:[%s529_s4 + $0x8] sm:$0xff]  ;;  %352 = vmatprep.subr.bf16.mxu1 %v393_v5  ;;  %s368_s24 = scalar_lea.vmem %s318_s23, 32  ;;  %p373_p1 = scmp.lt.s32.totalorder %s318_s23, %s318_s23 }
   0xc   :  { %v48_v18 = vld [vmem:[%s529_s4] sm:$0xff]  ;;  %v51_v19 = vld [vmem:[%s529_s4 + $0x18] sm:$0xff]  ;;  %v50_v20 = vld [vmem:[%s529_s4 + $0x10] sm:$0xff]  ;;  %356 = vmatprep.mubr.msk.bf16.mxu1 %vm394_vm1, %v393_v5  ;;  %p369_p0 = scmp.ne.s32.totalorder %s318_s23, %s368_s24  ;;  %p374_p2 = scmp.lt.s32.totalorder %s368_s24, %s368_s24 }
   0xd   :  { %v366_v21 = vld [vmem:[%s528_s3] sm:$0xff]   ;;  %v367_v4 = vld [vmem:[%s528_s3 + $0x8] sm:$0xff]  }
   0xe   :  { %126 = vperm.xlu1 %365, %v39_v7   ;;  %v53_v22 = vld [vmem:[%s531_s6] sm:$0x3]  ;;  %348 = vmatprep.mubr.msk.bf16.mxu0 %vm199_vm0, %v366_v21  ;;  %p375_p3 = por %p374_p2, %p373_p1 }
   0xf   :  { %121 = vperm.xlu0 %364, %v38_v8   ;;  %v325_v23 = vld [vmem:[%s525_s0] ss:$0 sm:$0xff] }
  0x10   :  { %p376_p4 = pnand %p375_p3, %p369_p0 }
  0x12   :  { %82 = vperm.xlu1 %365, %v33_v9  }
  0x13   :  { %77 = vperm.xlu0 %364, %v32_v10  }
  0x16   :  { %136 = vperm.xlu1 %365, %v41_v11  }
  0x17   :  { %131 = vperm.xlu0 %364, %v40_v12  }
  0x1a   :  { %92 = vperm.xlu1 %365, %v35_v13  }
  0x1b   :  { %87 = vperm.xlu0 %364, %v34_v14  }
  0x1e   :  { %146 = vperm.xlu1 %365, %v43_v15  }
  0x1f   :  { %141 = vperm.xlu0 %364, %v42_v16  }
  0x22   :  { %176 = vperm.xlu1 %365, %v49_v17  }
  0x23   :  { %171 = vperm.xlu0 %364, %v48_v18  }
  0x26   :  { %186 = vperm.xlu1 %365, %v51_v19  }
  0x27   :  { %181 = vperm.xlu0 %364, %v50_v20  }
  0x2b   :  { %263 = vperm.xlu0 %364, %v53_v22  }
  0x81   :  { %v112_v24 = vpop.permute.xlu1 %111 }
  0x82   :  { %v58_v25 = vpop.permute.xlu0 %57 }
  0x83   :  { %v101_v26 = vmul.f32 %v325_v23, %v58_v25 }
  0x85   :  { %v117_v27 = vpop.permute.xlu1 %116  ;;  %v149_v29 = vadd.f32 %v112_v24, %v101_v26  ;;  %v52_v24 = vld [vmem:[%s530_s5] sm:$0x1] }
  0x86   :  { %v63_v28 = vpop.permute.xlu0 %62 }
  0x87   :  { %v102_v30 = vmul.f32 %v325_v23, %v63_v28  ;;  %v157_v34 = vmax.f32 %v149_v29, 0.0 }
  0x89   :  { %v150_v31 = vadd.f32 %v117_v27, %v102_v30  ;;  %v73_v32 = vpop.permute.xlu1 %72 }
  0x8a   :  { %v68_v33 = vpop.permute.xlu0 %67  ;;  %v104_v36 = vmul.f32 %v325_v23, %v73_v32 }
  0x8b   :  { %v158_v35 = vmax.f32 %v150_v31, 0.0  ;;  %v103_v37 = vmul.f32 %v325_v23, %v68_v33 }
  0x8d   :  { %v165_v38 = vpack.c.bf16 %v158_v35, %v157_v34  ;;  %v127_v39 = vpop.permute.xlu1 %126 }
  0x8e   :  { %v122_v40 = vpop.permute.xlu0 %121  ;;  %v152_v41 = vadd.f32 %v127_v39, %v104_v36 }
  0x8f   :  { %v151_v42 = vadd.f32 %v122_v40, %v103_v37  ;;  %340 = vmatprep.subr.bf16.mxu0 %v165_v38 }
  0x90   :  { %341 = vmatpush3.bf16.msra.mxu0 %v165_v38  ;;  %v160_v43 = vmax.f32 %v152_v41, 0.0 }
  0x91   :  { %v159_v44 = vmax.f32 %v151_v42, 0.0  ;;  %v83_v45 = vpop.permute.xlu1 %82 }
  0x92   :  { %v78_v46 = vpop.permute.xlu0 %77  ;;  %v106_v48 = vmul.f32 %v325_v23, %v83_v45 }
  0x93   :  { %v166_v47 = vpack.c.bf16 %v160_v43, %v159_v44  ;;  %v105_v49 = vmul.f32 %v325_v23, %v78_v46 }
  0x95   :  { %342 = vmatprep.subr.bf16.mxu0 %v166_v47  ;;  %v137_v50 = vpop.permute.xlu1 %136 }
  0x96   :  { %343 = vmatpush3.bf16.msra.mxu0 %v166_v47  ;;  %v132_v51 = vpop.permute.xlu0 %131  ;;  %v154_v52 = vadd.f32 %v137_v50, %v106_v48 }
  0x97   :  { %v153_v53 = vadd.f32 %v132_v51, %v105_v49 }
  0x98   :  { %v162_v54 = vmax.f32 %v154_v52, 0.0 }
  0x99   :  { %v161_v55 = vmax.f32 %v153_v53, 0.0  ;;  %v93_v56 = vpop.permute.xlu1 %92 }
  0x9a   :  { %v88_v57 = vpop.permute.xlu0 %87  ;;  %v108_v59 = vmul.f32 %v325_v23, %v93_v56 }
  0x9b   :  { %v167_v58 = vpack.c.bf16 %v162_v54, %v161_v55  ;;  %v107_v60 = vmul.f32 %v325_v23, %v88_v57 }
  0x9d   :  { %344 = vmatprep.subr.bf16.mxu0 %v167_v58  ;;  %v147_v61 = vpop.permute.xlu1 %146 }
  0x9e   :  { %345 = vmatpush3.bf16.msra.mxu0 %v167_v58  ;;  %v142_v62 = vpop.permute.xlu0 %141  ;;  %v156_v63 = vadd.f32 %v147_v61, %v108_v59 }
  0x9f   :  { %v155_v0 = vadd.f32 %v142_v62, %v107_v60 }
  0xa0   :  { %v164_v1 = vmax.f32 %v156_v63, 0.0 }
  0xa1   :  { %v163_v2 = vmax.f32 %v155_v0, 0.0  ;;  %v177_v7 = vpop.permute.xlu1 %176 }
  0xa2   :  { %v172_v6 = vpop.permute.xlu0 %171 }
  0xa3   :  { %v168_v3 = vpack.c.bf16 %v164_v1, %v163_v2 }
  0xa5   :  { %346 = vmatprep.subr.bf16.mxu0 %v168_v3  ;;  %v187_v12 = vpop.permute.xlu1 %186 }
  0xa6   :  { %347 = vmatpush3.bf16.msra.mxu0 %v168_v3  ;;  %v182_v8 = vpop.permute.xlu0 %181 }
  0xa9   :  { %349 = vmatmul.mubr.msk.bf16.vlgmr.msra.gmra.mrb[0].mxu0 %vm199_vm0, %v367_v4 }
  0xaa   :  { %v264_v25 = vpop.permute.xlu0 %263 }
 0x17c   :  { %v350_v9 = vpop.f32.mrb[0].mxu0 }
 0x17d   :  { %v249_v10 = vadd.f32 %v350_v9, %v182_v8  ;;  %v240_v11 = vpop.f32.mrb[1].mxu0 }
 0x17e   :  { %v241_v13 = vadd.f32 %v240_v11, %v172_v6  ;;  %v351_v14 = vpop.f32.mrb[2].mxu0 }
 0x17f   :  { %v252_v15 = vadd.f32 %v351_v14, %v187_v12  ;;  %v243_v16 = vpop.f32.mrb[3].mxu0  ;;  %v257_v18 = vmax.f32 %v249_v10, 0.0 }
 0x180   :  { %v244_v17 = vadd.f32 %v243_v16, %v177_v7  ;;  %v255_v20 = vmax.f32 %v241_v13, 0.0 }
 0x181   :  { %v258_v19 = vmax.f32 %v252_v15, 0.0 }
 0x182   :  { %v256_v21 = vmax.f32 %v244_v17, 0.0 }
 0x183   :  { %v260_v22 = vpack.c.bf16 %v258_v19, %v257_v18 }
 0x184   :  { %v259_v23 = vpack.c.bf16 %v256_v21, %v255_v20 }
 0x186   :  { %353 = vmatpush3.bf16.msra.mxu1 %v259_v23 }
 0x187   :  { %354 = vmatprep.subr.bf16.mxu1 %v393_v5 }
 0x18a   :  { %355 = vmatpush3.bf16.msra.mxu1 %v260_v22 }
 0x18d   :  { %357 = vmatmul.mubr.msk.bf16.vlgmr.msra.gmra.mrb[0].mxu1 %vm266_vm2, %v52_v24 }
 0x260   :  { %v304_v26 = vpop.f32.mrb[0].mxu1 }
 0x261   :  { %v305_v27 = vadd.f32 %v304_v26, %v264_v25  ;;  %v358_v28 = vpop.f32.mrb[1].mxu1 }
 0x262   :  { %v307_v29 = vpop.f32.mrb[2].mxu1 }
 0x263   :  { %310 = vst [vmem:[#allocation2] sm:$0x3] %v305_v27  ;;  %v359_v30 = vpop.f32.mrb[3].mxu1 }
 0x264   :  { %379 = shalt.err (!%p376_p4)
}
 0x265   :  { %s380_s26 = scalar_lea.hbm %s532_s7, 32 }
 0x266   :  { %p381_p5 = scmp.ne.s32.totalorder %s532_s7, %s380_s26  ;;  %p384_p6 = scmp.lt.u32.totalorder %s380_s26, %s532_s7 }
 0x268   :  { %p386_p7 = pnand %p384_p6, %p381_p5 }
 0x26a   :  { %389 = shalt.err (!%p386_p7)
}
 0x26b   :  { %320 = dma.vmem_to_hbm [thread:$0]  %s318_s23, 32, %s532_s7, [#allocation3]  }
 0x26c   :  { %390 = dma.done.wait [#allocation3], 32  }
 0x26d   :  { %391 = vsyncadd [#allocation3], 4294967264 }
 0x26e   :  { %324 = vsyncpa [#allocation3], 1 }

</bundles_post_ra>
